<compile_context>
chip_gen: v7x
topology: tpu7x:2x2x1
jax: 0.10.0
libtpu: 0.0.40
codegen_flags: <defaults>
</compile_context>

<pallas_src>
import jax
import jax.numpy as jnp
from jax.experimental import pallas as pl
from jax.experimental.pallas import tpu as pltpu


def _round_up(x, m):
    return (x + m - 1) // m * m


# ---------------------------------------------------------------------------
# Fused 2-layer GraphSAGE kernel
# ---------------------------------------------------------------------------
def _fused_sage_kernel(a_ref, x_ref, w1s_ref, w1n_ref, b1_ref,
                       w2s_ref, w2n_ref, b2_ref, o_ref, h1_scr):
    phase = pl.program_id(0)          # 0: layer 1 -> scratch, 1: layer 2 -> output
    i = pl.program_id(1)              # node row tile
    tm = a_ref.shape[0]
    row0 = pl.multiple_of(i * tm, tm)

    @pl.when(phase == 0)
    def _layer1():
        # neighbor mean of raw features for this row tile: (tm, F), f32 accumulation
        ax = jnp.dot(a_ref[...], x_ref[...], preferred_element_type=jnp.float32)
        x_t = x_ref[pl.ds(row0, tm), :]
        h = jnp.dot(x_t, w1s_ref[...], preferred_element_type=jnp.float32)
        h = h + jnp.dot(ax, w1n_ref[...], preferred_element_type=jnp.float32)
        h = jnp.maximum(h + b1_ref[...], 0.0)                 # f32 bias + relu epilogue
        h1_scr[pl.ds(row0, tm), :] = h.astype(h1_scr.dtype)   # resident bf16 activations
        o_ref[...] = jnp.zeros_like(o_ref)                    # deterministic placeholder

    @pl.when(phase == 1)
    def _layer2():
        # neighbor mean of layer-1 activations (needs the FULL resident scratch)
        ah = jnp.dot(a_ref[...], h1_scr[...], preferred_element_type=jnp.float32)
        h1_t = h1_scr[pl.ds(row0, tm), :]
        h = jnp.dot(h1_t, w2s_ref[...], preferred_element_type=jnp.float32)
        h = h + jnp.dot(ah, w2n_ref[...], preferred_element_type=jnp.float32)
        o_ref[...] = (h + b2_ref[...]).astype(o_ref.dtype)    # lane-dense (tm, 128k) store


@jax.jit
def graphsage_forward(g, x, w1s, w1n, b1, w2s, w2n, b2):
    n = g.shape[0]
    f = x.shape[1]
    h1p = w1s.shape[1]
    h2p = w2s.shape[1]
    tm = min(128, n)
    assert n % tm == 0 and tm % 8 == 0
    nt = n // tm

    # bf16 at the kernel boundary: A dominates HBM bytes (N^2); f32 accumulation inside.
    g_bf = g.astype(jnp.bfloat16)
    x_bf = x.astype(jnp.bfloat16)

    flops = (2 * n * n * f + 2 * 2 * n * f * h1p          # layer 1
             + 2 * n * n * h1p + 2 * 2 * n * h1p * h2p)   # layer 2
    bytes_accessed = (2 * n * n * 2                        # A read in both phases (bf16)
                      + n * f * 2                          # X
                      + 2 * (f * h1p + h1p * h2p) * 2      # weights (bf16)
                      + (h1p + h2p) * 4                    # biases (f32)
                      + n * h2p * 4)                       # output (f32)

    return pl.pallas_call(
        _fused_sage_kernel,
        out_shape=jax.ShapeDtypeStruct((n, h2p), jnp.float32),
        grid_spec=pltpu.PrefetchScalarGridSpec(
            num_scalar_prefetch=0,
            grid=(2, nt),
            in_specs=[
                pl.BlockSpec((tm, n), lambda p, i: (i, 0)),      # A row slab (streamed)
                pl.BlockSpec((n, f), lambda p, i: (0, 0)),       # X (resident)
                pl.BlockSpec((f, h1p), lambda p, i: (0, 0)),     # W1_self  (resident)
                pl.BlockSpec((f, h1p), lambda p, i: (0, 0)),     # W1_neigh (resident)
                pl.BlockSpec((1, h1p), lambda p, i: (0, 0)),     # b1
                pl.BlockSpec((h1p, h2p), lambda p, i: (0, 0)),   # W2_self
                pl.BlockSpec((h1p, h2p), lambda p, i: (0, 0)),   # W2_neigh
                pl.BlockSpec((1, h2p), lambda p, i: (0, 0)),     # b2
            ],
            out_specs=pl.BlockSpec((tm, h2p), lambda p, i: (i, 0)),
            scratch_shapes=[pltpu.VMEM((n, h1p), jnp.bfloat16)],  # layer-1 activations
        ),
        compiler_params=pltpu.CompilerParams(
            dimension_semantics=("arbitrary", "arbitrary"),
            vmem_limit_bytes=32 * 1024 * 1024,   # fits v5e/v6e/v7x scoped VMEM budgets
        ),
        cost_estimate=pl.CostEstimate(
            flops=flops, transcendentals=0, bytes_accessed=bytes_accessed),
    )(g_bf, x_bf, w1s, w1n, b1, w2s, w2n, b2)


# ---------------------------------------------------------------------------
# Module-equivalent wrapper (parameter setup is plain-JAX glue)
# ---------------------------------------------------------------------------
class GraphSAGE:
    LANE = 128

    def __init__(self, key, in_feats, h_feats):
        self.in_feats = in_feats
        self.h_feats = list(h_feats)
        h1, h2 = self.h_feats
        ks = jax.random.split(key, 6)

        def lin(k, fan_in, shape):
            bound = 1.0 / jnp.sqrt(jnp.float32(fan_in))
            return jax.random.uniform(k, shape, jnp.float32, -bound, bound)

        # f32 master parameters (unpadded) -- also used by the reference check.
        self.w1_self = lin(ks[0], in_feats, (in_feats, h1))
        self.w1_neigh = lin(ks[1], in_feats, (in_feats, h1))
        self.b1 = lin(ks[2], in_feats, (1, h1))
        self.w2_self = lin(ks[3], h1, (h1, h2))
        self.w2_neigh = lin(ks[4], h1, (h1, h2))
        self.b2 = lin(ks[5], h1, (1, h2))

        # Kernel parameters: zero-pad hidden dims to multiples of 128 (lane-dense MXU
        # outputs / unmasked stores) and cast weights to bf16; biases stay f32.
        self.h1p = _round_up(h1, self.LANE)
        self.h2p = _round_up(h2, self.LANE)

        def pad2(w, rows, cols):
            return jnp.pad(w, ((0, rows - w.shape[0]), (0, cols - w.shape[1])))

        self.k_w1s = pad2(self.w1_self, in_feats, self.h1p).astype(jnp.bfloat16)
        self.k_w1n = pad2(self.w1_neigh, in_feats, self.h1p).astype(jnp.bfloat16)
        self.k_b1 = pad2(self.b1, 1, self.h1p)
        self.k_w2s = pad2(self.w2_self, self.h1p, self.h2p).astype(jnp.bfloat16)
        self.k_w2n = pad2(self.w2_neigh, self.h1p, self.h2p).astype(jnp.bfloat16)
        self.k_b2 = pad2(self.b2, 1, self.h2p)

    def __call__(self, g, x):
        out_padded = graphsage_forward(g, x, self.k_w1s, self.k_w1n, self.k_b1,
                                       self.k_w2s, self.k_w2n, self.k_b2)
        return out_padded[:, : self.h_feats[1]]


# ---------------------------------------------------------------------------
# Main: deterministic inputs, run kernel, verify against plain JAX
# ---------------------------------------------------------------------------
if __name__ == "__main__":
    key = jax.random.PRNGKey(0)
    k_adj, k_x, k_model = jax.random.split(key, 3)

    N_NODES, IN_FEATS = 256, 16
    H_FEATS = [32, 32]

    # Random undirected graph; 'mean' aggregation = row-normalized dense adjacency.
    adj = (jax.random.uniform(k_adj, (N_NODES, N_NODES)) < 0.1).astype(jnp.float32)
    adj = jnp.maximum(adj, adj.T)
    adj = adj * (1.0 - jnp.eye(N_NODES, dtype=jnp.float32))   # SAGE: neighbors only
    deg = jnp.maximum(jnp.sum(adj, axis=1, keepdims=True), 1.0)
    g = adj / deg                                             # (N, N) mean aggregator

    x = jax.random.normal(k_x, (N_NODES, IN_FEATS), jnp.float32)

    model = GraphSAGE(k_model, IN_FEATS, H_FEATS)
    out = jax.block_until_ready(model(g, x))

    # Plain-JAX reference with the same bf16 quantization points as the kernel.
    g32 = g.astype(jnp.bfloat16).astype(jnp.float32)
    x32 = x.astype(jnp.bfloat16).astype(jnp.float32)

    def q(w):
        return w.astype(jnp.bfloat16).astype(jnp.float32)

    h1 = jnp.maximum(x32 @ q(model.w1_self) + (g32 @ x32) @ q(model.w1_neigh) + model.b1, 0.0)
    h1 = h1.astype(jnp.bfloat16).astype(jnp.float32)          # layer-1 acts live in bf16 VMEM
    ref = h1 @ q(model.w2_self) + (g32 @ h1) @ q(model.w2_neigh) + model.b2

    assert out.shape == (N_NODES, H_FEATS[1])
    assert jnp.allclose(out, ref, atol=5e-2, rtol=5e-2), float(jnp.max(jnp.abs(out - ref)))

    print("KERNEL_OK")
</pallas_src>

<mosaic_0001>
module attributes {stable_mosaic.version = 11 : i64} {
  func.func @_fused_sage_kernel(%arg0: i32, %arg1: i32, %arg2: memref<128x256xbf16, #tpu.memory_space<vmem>>, %arg3: memref<256x16xbf16, #tpu.memory_space<vmem>>, %arg4: memref<16x128xbf16, #tpu.memory_space<vmem>>, %arg5: memref<16x128xbf16, #tpu.memory_space<vmem>>, %arg6: memref<1x128xf32, #tpu.memory_space<vmem>>, %arg7: memref<128x128xbf16, #tpu.memory_space<vmem>>, %arg8: memref<128x128xbf16, #tpu.memory_space<vmem>>, %arg9: memref<1x128xf32, #tpu.memory_space<vmem>>, %arg10: memref<128x128xf32, #tpu.memory_space<vmem>>, %arg11: memref<256x128xbf16, #tpu.memory_space<vmem>>) attributes {dimension_semantics = [#tpu.dimension_semantics<arbitrary>, #tpu.dimension_semantics<arbitrary>], iteration_bounds = array<i64: 2, 2>, scalar_prefetch = 0 : i64, scratch_operands = 1 : i64, tpu.core_type = #tpu.core_type<tc>, window_params = [{transform_indices = @transform_0, window_bounds = array<i64: 128, 256>}, {pipeline_mode = #tpu.pipeline_mode<synchronous>, transform_indices = @transform_1, window_bounds = array<i64: 256, 16>}, {pipeline_mode = #tpu.pipeline_mode<synchronous>, transform_indices = @transform_2, window_bounds = array<i64: 16, 128>}, {pipeline_mode = #tpu.pipeline_mode<synchronous>, transform_indices = @transform_3, window_bounds = array<i64: 16, 128>}, {pipeline_mode = #tpu.pipeline_mode<synchronous>, transform_indices = @transform_4, window_bounds = array<i64: 1, 128>}, {pipeline_mode = #tpu.pipeline_mode<synchronous>, transform_indices = @transform_5, window_bounds = array<i64: 128, 128>}, {pipeline_mode = #tpu.pipeline_mode<synchronous>, transform_indices = @transform_6, window_bounds = array<i64: 128, 128>}, {pipeline_mode = #tpu.pipeline_mode<synchronous>, transform_indices = @transform_7, window_bounds = array<i64: 1, 128>}, {transform_indices = @transform_8, window_bounds = array<i64: 128, 128>}]} {
    %c128_i32 = arith.constant 128 : i32
    %0 = arith.muli %arg1, %c128_i32 : i32
    %1 = tpu.assume_multiple %0, 128 : i32
    %c0_i32 = arith.constant 0 : i32
    %2 = arith.cmpi eq, %arg0, %c0_i32 : i32
    %3 = arith.extui %2 : i1 to i32
    %c0_i32_0 = arith.constant 0 : i32
    %4 = arith.cmpi ne, %3, %c0_i32_0 : i32
    scf.if %4 {
      %c0 = arith.constant 0 : index
      %c0_2 = arith.constant 0 : index
      %8 = vector.load %arg2[%c0, %c0_2] : memref<128x256xbf16, #tpu.memory_space<vmem>>, vector<128x256xbf16>
      %c0_3 = arith.constant 0 : index
      %c0_4 = arith.constant 0 : index
      %9 = vector.load %arg3[%c0_3, %c0_4] : memref<256x16xbf16, #tpu.memory_space<vmem>>, vector<256x16xbf16>
      %cst = arith.constant dense<0.000000e+00> : vector<128x16xf32>
      %10 = tpu.matmul %8, %9, %cst {dimension_numbers = #tpu.dot_dimension_numbers<[1], [0], [0], [1], [0, 0, 1, 1], [], []>} : vector<128x256xbf16>, vector<256x16xbf16>, vector<128x16xf32> -> vector<128x16xf32>
      %11 = arith.index_cast %1 : i32 to index
      %c0_5 = arith.constant 0 : index
      %12 = vector.load %arg3[%11, %c0_5] : memref<256x16xbf16, #tpu.memory_space<vmem>>, vector<128x16xbf16>
      %c0_6 = arith.constant 0 : index
      %c0_7 = arith.constant 0 : index
      %13 = vector.load %arg4[%c0_6, %c0_7] : memref<16x128xbf16, #tpu.memory_space<vmem>>, vector<16x128xbf16>
      %cst_8 = arith.constant dense<0.000000e+00> : vector<128x128xf32>
      %14 = tpu.matmul %12, %13, %cst_8 {dimension_numbers = #tpu.dot_dimension_numbers<[1], [0], [0], [1], [0, 0, 1, 1], [], []>} : vector<128x16xbf16>, vector<16x128xbf16>, vector<128x128xf32> -> vector<128x128xf32>
      %c0_9 = arith.constant 0 : index
      %c0_10 = arith.constant 0 : index
      %15 = vector.load %arg5[%c0_9, %c0_10] : memref<16x128xbf16, #tpu.memory_space<vmem>>, vector<16x128xbf16>
      %cst_11 = arith.constant dense<0.000000e+00> : vector<128x128xf32>
      %16 = tpu.matmul %10, %15, %cst_11 {dimension_numbers = #tpu.dot_dimension_numbers<[1], [0], [0], [1], [0, 0, 1, 1], [], []>} : vector<128x16xf32>, vector<16x128xbf16>, vector<128x128xf32> -> vector<128x128xf32>
      %17 = arith.addf %14, %16 : vector<128x128xf32>
      %c0_12 = arith.constant 0 : index
      %c0_13 = arith.constant 0 : index
      %18 = vector.load %arg6[%c0_12, %c0_13] : memref<1x128xf32, #tpu.memory_space<vmem>>, vector<1x128xf32>
      %19 = vector.broadcast %18 : vector<1x128xf32> to vector<128x128xf32>
      %20 = arith.addf %17, %19 : vector<128x128xf32>
      %cst_14 = arith.constant 0.000000e+00 : f32
      %21 = vector.broadcast %cst_14 : f32 to vector<128x128xf32>
      %22 = arith.maximumf %20, %21 : vector<128x128xf32>
      %23 = arith.truncf %22 : vector<128x128xf32> to vector<128x128xbf16>
      %24 = arith.index_cast %1 : i32 to index
      %c0_15 = arith.constant 0 : index
      %25 = vector.load %arg11[%24, %c0_15] : memref<256x128xbf16, #tpu.memory_space<vmem>>, vector<128x128xbf16>
      tpu.vector_store %arg11[%24, %c0_15], %23 {strides = array<i32>} : memref<256x128xbf16, #tpu.memory_space<vmem>>, vector<128x128xbf16>,
      %cst_16 = arith.constant 0.000000e+00 : f32
      %26 = vector.broadcast %cst_16 : f32 to vector<128x128xf32>
      %c0_17 = arith.constant 0 : index
      %c0_18 = arith.constant 0 : index
      %27 = vector.load %arg10[%c0_17, %c0_18] : memref<128x128xf32, #tpu.memory_space<vmem>>, vector<128x128xf32>
      tpu.vector_store %arg10[%c0_17, %c0_18], %26 {strides = array<i32>} : memref<128x128xf32, #tpu.memory_space<vmem>>, vector<128x128xf32>,
    } else {
    }
    %c1_i32 = arith.constant 1 : i32
    %5 = arith.cmpi eq, %arg0, %c1_i32 : i32
    %6 = arith.extui %5 : i1 to i32
    %c0_i32_1 = arith.constant 0 : i32
    %7 = arith.cmpi ne, %6, %c0_i32_1 : i32
    scf.if %7 {
      %c0 = arith.constant 0 : index
      %c0_2 = arith.constant 0 : index
      %8 = vector.load %arg2[%c0, %c0_2] : memref<128x256xbf16, #tpu.memory_space<vmem>>, vector<128x256xbf16>
      %c0_3 = arith.constant 0 : index
      %c0_4 = arith.constant 0 : index
      %9 = vector.load %arg11[%c0_3, %c0_4] : memref<256x128xbf16, #tpu.memory_space<vmem>>, vector<256x128xbf16>
      %cst = arith.constant dense<0.000000e+00> : vector<128x128xf32>
      %10 = tpu.matmul %8, %9, %cst {dimension_numbers = #tpu.dot_dimension_numbers<[1], [0], [0], [1], [0, 0, 1, 1], [], []>} : vector<128x256xbf16>, vector<256x128xbf16>, vector<128x128xf32> -> vector<128x128xf32>
      %11 = arith.index_cast %1 : i32 to index
      %c0_5 = arith.constant 0 : index
      %12 = vector.load %arg11[%11, %c0_5] : memref<256x128xbf16, #tpu.memory_space<vmem>>, vector<128x128xbf16>
      %c0_6 = arith.constant 0 : index
      %c0_7 = arith.constant 0 : index
      %13 = vector.load %arg7[%c0_6, %c0_7] : memref<128x128xbf16, #tpu.memory_space<vmem>>, vector<128x128xbf16>
      %cst_8 = arith.constant dense<0.000000e+00> : vector<128x128xf32>
      %14 = tpu.matmul %12, %13, %cst_8 {dimension_numbers = #tpu.dot_dimension_numbers<[1], [0], [0], [1], [0, 0, 1, 1], [], []>} : vector<128x128xbf16>, vector<128x128xbf16>, vector<128x128xf32> -> vector<128x128xf32>
      %c0_9 = arith.constant 0 : index
      %c0_10 = arith.constant 0 : index
      %15 = vector.load %arg8[%c0_9, %c0_10] : memref<128x128xbf16, #tpu.memory_space<vmem>>, vector<128x128xbf16>
      %cst_11 = arith.constant dense<0.000000e+00> : vector<128x128xf32>
      %16 = tpu.matmul %10, %15, %cst_11 {dimension_numbers = #tpu.dot_dimension_numbers<[1], [0], [0], [1], [0, 0, 1, 1], [], []>} : vector<128x128xf32>, vector<128x128xbf16>, vector<128x128xf32> -> vector<128x128xf32>
      %17 = arith.addf %14, %16 : vector<128x128xf32>
      %c0_12 = arith.constant 0 : index
      %c0_13 = arith.constant 0 : index
      %18 = vector.load %arg9[%c0_12, %c0_13] : memref<1x128xf32, #tpu.memory_space<vmem>>, vector<1x128xf32>
      %19 = vector.broadcast %18 : vector<1x128xf32> to vector<128x128xf32>
      %20 = arith.addf %17, %19 : vector<128x128xf32>
      %c0_14 = arith.constant 0 : index
      %c0_15 = arith.constant 0 : index
      %21 = vector.load %arg10[%c0_14, %c0_15] : memref<128x128xf32, #tpu.memory_space<vmem>>, vector<128x128xf32>
      tpu.vector_store %arg10[%c0_14, %c0_15], %20 {strides = array<i32>} : memref<128x128xf32, #tpu.memory_space<vmem>>, vector<128x128xf32>,
    } else {
    }
    return
  }
  func.func @transform_0(%arg0: i32, %arg1: i32) -> (i32, i32) {
    %c0_i32 = arith.constant 0 : i32
    %c0_i32_0 = arith.constant 0 : i32
    return %arg1, %c0_i32 : i32, i32
  }
  func.func @transform_1(%arg0: i32, %arg1: i32) -> (i32, i32) {
    %c0_i32 = arith.constant 0 : i32
    %c0_i32_0 = arith.constant 0 : i32
    %c0_i32_1 = arith.constant 0 : i32
    return %c0_i32, %c0_i32_0 : i32, i32
  }
  func.func @transform_2(%arg0: i32, %arg1: i32) -> (i32, i32) {
    %c0_i32 = arith.constant 0 : i32
    %c0_i32_0 = arith.constant 0 : i32
    %c0_i32_1 = arith.constant 0 : i32
    return %c0_i32, %c0_i32_0 : i32, i32
  }
  func.func @transform_3(%arg0: i32, %arg1: i32) -> (i32, i32) {
    %c0_i32 = arith.constant 0 : i32
    %c0_i32_0 = arith.constant 0 : i32
    %c0_i32_1 = arith.constant 0 : i32
    return %c0_i32, %c0_i32_0 : i32, i32
  }
  func.func @transform_4(%arg0: i32, %arg1: i32) -> (i32, i32) {
    %c0_i32 = arith.constant 0 : i32
    %c0_i32_0 = arith.constant 0 : i32
    %c0_i32_1 = arith.constant 0 : i32
    return %c0_i32, %c0_i32_0 : i32, i32
  }
  func.func @transform_5(%arg0: i32, %arg1: i32) -> (i32, i32) {
    %c0_i32 = arith.constant 0 : i32
    %c0_i32_0 = arith.constant 0 : i32
    %c0_i32_1 = arith.constant 0 : i32
    return %c0_i32, %c0_i32_0 : i32, i32
  }
  func.func @transform_6(%arg0: i32, %arg1: i32) -> (i32, i32) {
    %c0_i32 = arith.constant 0 : i32
    %c0_i32_0 = arith.constant 0 : i32
    %c0_i32_1 = arith.constant 0 : i32
    return %c0_i32, %c0_i32_0 : i32, i32
  }
  func.func @transform_7(%arg0: i32, %arg1: i32) -> (i32, i32) {
    %c0_i32 = arith.constant 0 : i32
    %c0_i32_0 = arith.constant 0 : i32
    %c0_i32_1 = arith.constant 0 : i32
    return %c0_i32, %c0_i32_0 : i32, i32
  }
  func.func @transform_8(%arg0: i32, %arg1: i32) -> (i32, i32) {
    %c0_i32 = arith.constant 0 : i32
    %c0_i32_0 = arith.constant 0 : i32
    return %arg1, %c0_i32 : i32, i32
  }
}

</mosaic_0001>

<bundles_post_ra>
// kernel: graphsage_forward.1
= control target key start
LH: loop header
LB: loop body
LE: loop exit
PB: predicated region body
PF: predicated region fallthrough
CT: control target
= control target key end

     0   :  { %13 = vsyncpa [#allocation4], 0  ;;  %s2919_s0 = inlined_call_operand.vmem [shape: bf16[256,256], index: 0, kind: input, shape index: {}]   ;;  %s2920_s1 = inlined_call_operand.vmem [shape: bf16[256,16], index: 1, kind: input, shape index: {}]   ;;  %s2921_s2 = inlined_call_operand.vmem [shape: bf16[16,128], index: 2, kind: input, shape index: {}]   ;;  %s2922_s3 = inlined_call_operand.vmem [shape: bf16[16,128], index: 3, kind: input, shape index: {}]   ;;  %s2923_s4 = inlined_call_operand.vmem [shape: f32[1,128], index: 4, kind: input, shape index: {}]   ;;  %s2924_s5 = inlined_call_operand.vmem [shape: bf16[128,128], index: 5, kind: input, shape index: {}]   ;;  %s2925_s6 = inlined_call_operand.vmem [shape: bf16[128,128], index: 6, kind: input, shape index: {}]   ;;  %s2926_s7 = inlined_call_operand.vmem [shape: f32[1,128], index: 7, kind: input, shape index: {}]   ;;  %s2927_s8 = inlined_call_operand.hbm [shape: f32[256,128], index: 8, kind: output, shape index: {}]  }
   0x1   :  { %15 = vsyncpa [#allocation4 + $0x1], 0  ;;  %s2519_s27 = smov 0   ;;  %s2521_s28 = smov 0  }
   0x2   :  { %s2523_s29 = smov 0   ;;  %s2525_s30 = smov 0  }
   0x3   :  { %s2527_s9 = smov 0   ;;  %s2529_s10 = smov 0  }
   0x4   :  { %s2531_s11 = smov 0   ;;  %s2533_s12 = smov 0  }
   0x5 LB: > { %2932 = sst [smem:[#allocation6_spill]] %s2460_s10  ;;  %s1778_s13 = sadd.s32 4294967295, %s2468_s12   ;;  %s2468_s12 = sphi %s2533_s12, %s21_s12   ;;  %s2464_s11 = sphi %s2531_s11, %s2942_s11   ;;  %s2460_s10 = sphi %s2529_s10, %s2941_s10   ;;  %s2456_s9 = sphi %s2527_s9, %s2940_s9   ;;  %s2452_s30 = sphi %s2525_s30, %s2939_s30   ;;  %s2448_s29 = sphi %s2523_s29, %s2945_s29   ;;  %s2444_s28 = sphi %s2521_s28, %s2944_s28   ;;  %s2440_s27 = sphi %s2519_s27, %s2943_s27  }
   0x6   : > { %2933 = sst [smem:[#allocation7_spill]] %s2464_s11  ;;  %s1779_s14 = sadd.s32 4294967294, %s2468_s12  }
   0x7   : > { %s30_s15 = sadd.s32 1, %s2460_s10  ;;  %s33_s16 = sadd.s32 1, %s2464_s11 }
   0x8   : > { %p31_p0 = scmp.ge.s32.totalorder %s30_s15, 2  ;;  %s213_s17 = sadd.s32 1, %s2448_s29 }
   0x9   : > { %p223_p1 = scmp.ne.s32.totalorder %s2448_s29, %s2444_s28  ;;  %p224_p2 = scmp.eq.s32.totalorder %s1778_s13, 3 }
   0xa   : > { %s2947_s15 = smov (%p31_p0, %s30_s15), 0  ;;  %s2949_s16 = smov (!%p31_p0, %s33_s16), %s2464_s11 }
   0xb   : > { %2934 = sst [smem:[#allocation8_spill]] %s2947_s15  ;;  %s210_s18 = ssub.s32 %s2460_s10, %s2947_s15 }
   0xc   : > { %p2571_p3 = por %p224_p2, %p223_p1  ;;  %p35_p4 = scmp.ge.s32.totalorder %s2949_s16, 2 }
   0xd   : > { %p211_p5 = scmp.eq.s32.totalorder %s210_s18, 0  ;;  %p229_p6 = scmp.ne.s32.totalorder %s2444_s28, %s2440_s27 }
   0xe   : > { %p230_p7 = scmp.eq.s32.totalorder %s1779_s14, 3  ;;  %s2951_s16 = smov (%p35_p4, %s2949_s16), 0 }
   0xf   : > { %2936 = sst [smem:[#allocation9_spill]] %s2951_s16  ;;  %p1782_p9 = scmp.ge.s32.totalorder %s2468_s12, 1 }
  0x10   : > { %s2580_s20 = scalar_select %p211_p5, %s2448_s29, %s213_s17  }
  0x11   : > { %p2582_p8 = por %p230_p7, %p229_p6  ;;  %p279_p10 = scmp.lt.s32.totalorder %s2468_s12, 5 }
  0x13   : > { %p280_p11 = pnand %p1782_p9, %p279_p10 }
  0x14   : > { %s2929_s22 = sand.u32 (!%p280_p11), 1, %s2444_s28   ;;  %s1784_s23 = sshll.u32 (!%p280_p11), %s2452_s30, 4 }
  0x15   : > { %283 = sbr.rel (%p280_p11) target bundleno = 1173 (0x495), region = 52  ;;  %s1783_s24 = sshll.u32 (!%p280_p11), %s2929_s22, 7 }
  0x16   : > { %p315_p12 = scmp.lt.s32.totalorder (!%p280_p11), %s1784_s23, 31  ;;  %s2593_s25 = sshll.u32 (!%p280_p11), %s2452_s30, 7 }
  0x17   : > { %s2600_s18 = scalar_lea.vmem (!%p280_p11), [#allocation3], %s1783_s24  ;;  %p1788_p13 = scmp.ne.s32.totalorder (!%p280_p11), %s2456_s9, 0 }
  0x1c   : > { %s2953_s23 = smov (!%p315_p12, %s1784_s23), 31  ;;  %327 = sbr.rel (%p1788_p13) target bundleno = 587 (0x24b), region = 56 }
  0x1d   : > { %s1898_s26 = sshll.u32 %s2953_s23, 3  ;;  %v2284_v0 = vld [vmem:[%s2920_s1 + $0x40] sm:$0xff] (!%p1788_p13)   ;;  %v2286_v2 = vld [vmem:[%s2920_s1 + $0x48] sm:$0xff] (!%p1788_p13)   ;;  %v2288_v4 = vld [vmem:[%s2920_s1 + $0x50] sm:$0xff] (!%p1788_p13)   ;;  %vm679_vm0 = vcmask (!%p1788_p13), 130048   ;;  %s1055_s10 = sshra.s32 (!%p1788_p13), %s2593_s25, 4 }
  0x1e   : > { %s2598_s17 = scalar_lea.vmem %s2919_s0, %s1898_s26  ;;  %v2285_v1 = vld [vmem:[%s2920_s1] sm:$0xff] (!%p1788_p13)   ;;  %1900 = vmatprep.subr.bf16.mxu0 (!%p1788_p13), %v2284_v0  ;;  %v2287_v3 = vld [vmem:[%s2920_s1 + $0x8] sm:$0xff] (!%p1788_p13)   ;;  %v2289_v5 = vld [vmem:[%s2920_s1 + $0x10] sm:$0xff] (!%p1788_p13)   ;;  %s649_s26 = sshra.s32 (!%p1788_p13), %s2593_s25, 3 }
  0x1f   : > { %1901 = vmatpush3.bf16.msra.mxu0 (!%p1788_p13), %v2285_v1  ;;  %v2290_v6 = vld [vmem:[%s2920_s1 + $0x58] sm:$0xff] (!%p1788_p13)   ;;  %v2292_v8 = vld [vmem:[%s2920_s1 + $0x60] sm:$0xff] (!%p1788_p13)   ;;  %v2294_v10 = vld [vmem:[%s2920_s1 + $0x68] sm:$0xff] (!%p1788_p13)   ;;  %s1821_s24 = sshll.u32 (!%p1788_p13), %s649_s26, 2  ;;  %s1857_s22 = sshll.u32 (!%p1788_p13), %s1055_s10, 3 }
  0x20   : > { %1902 = vmatprep.subr.bf16.mxu0 (!%p1788_p13), %v2286_v2  ;;  %v2291_v7 = vld [vmem:[%s2920_s1 + $0x18] sm:$0xff] (!%p1788_p13)   ;;  %v2293_v9 = vld [vmem:[%s2920_s1 + $0x20] sm:$0xff] (!%p1788_p13)   ;;  %v2295_v12 = vld [vmem:[%s2920_s1 + $0x28] sm:$0xff] (!%p1788_p13)   ;;  %s2677_s15 = scalar_lea.vmem (!%p1788_p13), %s2920_s1, %s1821_s24  ;;  %s2745_s23 = scalar_lea.vmem (!%p1788_p13), [#allocation2], %s1857_s22 }
  0x21   : > { %v2302_v11 = vld [vmem:[%s2598_s17 + $0x4] ss:$8 sps:$4 sm:$0xff] (!%p1788_p13)   ;;  %v2296_v13 = vld [vmem:[%s2920_s1 + $0x70] sm:$0xff] (!%p1788_p13)   ;;  %v2298_v15 = vld [vmem:[%s2920_s1 + $0x78] sm:$0xff] (!%p1788_p13)  }
  0x22   : > { %584 = vmatprep.mubr.bf16.mxu0 (!%p1788_p13), %v2302_v11  ;;  %v2297_v14 = vld [vmem:[%s2920_s1 + $0x30] sm:$0xff] (!%p1788_p13)   ;;  %v2299_v16 = vld [vmem:[%s2920_s1 + $0x38] sm:$0xff] (!%p1788_p13)   ;;  %v2300_v17 = vld [vmem:[%s2598_s17] ss:$8 sps:$4 sm:$0xff] (!%p1788_p13)  }
  0x23   : > { %1903 = vmatpush3.bf16.msra.mxu0 %v2287_v3  ;;  %v2303_v18 = vld [vmem:[%s2598_s17 + $0x14] ss:$8 sps:$4 sm:$0xff]   ;;  %v2305_v19 = vld [vmem:[%s2598_s17 + $0x10] ss:$8 sps:$4 sm:$0xff]   ;;  %v2306_v20 = vld [vmem:[%s2598_s17 + $0x24] ss:$8 sps:$4 sm:$0xff]  }
  0x24   : > { %1904 = vmatprep.subr.bf16.mxu0 %v2288_v4  ;;  %v2308_v21 = vld [vmem:[%s2598_s17 + $0x20] ss:$8 sps:$4 sm:$0xff]   ;;  %v2309_v22 = vld [vmem:[%s2598_s17 + $0x34] ss:$8 sps:$4 sm:$0xff]   ;;  %v2311_v23 = vld [vmem:[%s2598_s17 + $0x30] ss:$8 sps:$4 sm:$0xff]  }
  0x25   : > { %v2312_v24 = vld [vmem:[%s2598_s17 + $0x44] ss:$8 sps:$4 sm:$0xff]   ;;  %v2314_v25 = vld [vmem:[%s2598_s17 + $0x40] ss:$8 sps:$4 sm:$0xff]   ;;  %v2315_v26 = vld [vmem:[%s2598_s17 + $0x54] ss:$8 sps:$4 sm:$0xff]  }
  0x26   : > { %v2317_v27 = vld [vmem:[%s2598_s17 + $0x50] ss:$8 sps:$4 sm:$0xff]   ;;  %v2318_v28 = vld [vmem:[%s2598_s17 + $0x64] ss:$8 sps:$4 sm:$0xff]   ;;  %v2320_v29 = vld [vmem:[%s2598_s17 + $0x60] ss:$8 sps:$4 sm:$0xff]  }
  0x27   : > { %1905 = vmatpush3.bf16.msra.mxu0 %v2289_v5  ;;  %v2321_v30 = vld [vmem:[%s2598_s17 + $0x74] ss:$8 sps:$4 sm:$0xff]   ;;  %v2323_v31 = vld [vmem:[%s2598_s17 + $0x70] ss:$8 sps:$4 sm:$0xff]   ;;  %v2324_v32 = vld [vmem:[%s2922_s3] sm:$0xff]  }
  0x28   : > { %1906 = vmatprep.subr.bf16.mxu0 %v2290_v6  ;;  %2094 = vmatprep.subr.bf16.mxu1 %v2324_v32  ;;  %v2325_v33 = vld [vmem:[%s2921_s2] sm:$0xff]  }
  0x29   : > { %2095 = vmatpush3.bf16.msra.mxu1 %v2324_v32 }
  0x2a   : > { %2120 = vmatprep.subr.bf16.mxu1 %v2325_v33 }
  0x2b   : > { %1907 = vmatpush3.bf16.msra.mxu0 %v2291_v7 }
  0x2c   : > { %1908 = vmatprep.subr.bf16.mxu0 %v2292_v8 }
  0x2f   : > { %1909 = vmatpush3.bf16.msra.mxu0 %v2293_v9 }
  0x30   : > { %1910 = vmatprep.subr.bf16.mxu0 %v2294_v10 }
  0x33   : > { %1911 = vmatpush3.bf16.msra.mxu0 %v2295_v12 }
  0x34   : > { %1912 = vmatprep.subr.bf16.mxu0 %v2296_v13 }
  0x37   : > { %1913 = vmatpush3.bf16.msra.mxu0 %v2297_v14 }
  0x38   : > { %1914 = vmatprep.subr.bf16.mxu0 %v2298_v15 }
  0x3b   : > { %1915 = vmatpush3.bf16.msra.mxu0 %v2299_v16 }
  0x3e   : > { %585 = vmatmul.mubr.bf16.vlgmr.msra.gmra.mrb[0].mxu0 %v2300_v17  ;;  %v2326_v17 = vld [vmem:[%s2677_s15] sm:$0xff]  }
  0x3f   : > { %592 = vmatprep.mubr.bf16.mxu0 %v2303_v18 }
  0x46   : > { %593 = vmatmul.mubr.bf16.gmra.mrb[4].mxu0 %v2305_v19  ;;  %v2327_v19 = vld [vmem:[%s2677_s15 + $0x8] sm:$0xff]  }
  0x47   : > { %600 = vmatprep.mubr.bf16.mxu0 %v2306_v20  ;;  %v2328_v20 = vld [vmem:[%s2677_s15 + $0x10] sm:$0xff]  }
  0x4e   : > { %601 = vmatmul.mubr.bf16.gmra.mrb[8].mxu0 %v2308_v21  ;;  %v2329_v21 = vld [vmem:[%s2677_s15 + $0x18] sm:$0xff]  }
  0x4f   : > { %608 = vmatprep.mubr.bf16.mxu0 %v2309_v22  ;;  %v2330_v22 = vld [vmem:[%s2677_s15 + $0x20] sm:$0xff]  }
  0x56   : > { %609 = vmatmul.mubr.bf16.gmra.mrb[12].mxu0 %v2311_v23  ;;  %v2331_v23 = vld [vmem:[%s2677_s15 + $0x28] sm:$0xff]  }
  0x57   : > { %616 = vmatprep.mubr.bf16.mxu0 %v2312_v24  ;;  %v2332_v24 = vld [vmem:[%s2677_s15 + $0x30] sm:$0xff]  }
  0x5e   : > { %617 = vmatmul.mubr.bf16.gmra.mrb[16].mxu0 %v2314_v25  ;;  %v2333_v25 = vld [vmem:[%s2677_s15 + $0x38] sm:$0xff]  }
  0x5f   : > { %624 = vmatprep.mubr.bf16.mxu0 %v2315_v26  ;;  %v2470_v26 = vmov 0.0  }
  0x60   : > { %1067 = vst [vmem:[%s2600_s18] sm:$0xff] %v2470_v26  ;;  %1068 = vst [vmem:[%s2600_s18 + $0x8] sm:$0xff] %v2470_v26 }
  0x61   : > { %1069 = vst [vmem:[%s2600_s18 + $0x10] sm:$0xff] %v2470_v26  ;;  %1070 = vst [vmem:[%s2600_s18 + $0x18] sm:$0xff] %v2470_v26 }
  0x62   : > { %1071 = vst [vmem:[%s2600_s18 + $0x20] sm:$0xff] %v2470_v26  ;;  %1072 = vst [vmem:[%s2600_s18 + $0x28] sm:$0xff] %v2470_v26 }
  0x63   : > { %1073 = vst [vmem:[%s2600_s18 + $0x30] sm:$0xff] %v2470_v26  ;;  %1074 = vst [vmem:[%s2600_s18 + $0x38] sm:$0xff] %v2470_v26 }
  0x64   : > { %1075 = vst [vmem:[%s2600_s18 + $0x40] sm:$0xff] %v2470_v26  ;;  %1076 = vst [vmem:[%s2600_s18 + $0x48] sm:$0xff] %v2470_v26 }
  0x65   : > { %1077 = vst [vmem:[%s2600_s18 + $0x50] sm:$0xff] %v2470_v26  ;;  %1078 = vst [vmem:[%s2600_s18 + $0x58] sm:$0xff] %v2470_v26 }
  0x66   : > { %625 = vmatmul.mubr.bf16.gmra.mrb[20].mxu0 %v2317_v27  ;;  %1079 = vst [vmem:[%s2600_s18 + $0x60] sm:$0xff] %v2470_v26  ;;  %1080 = vst [vmem:[%s2600_s18 + $0x68] sm:$0xff] %v2470_v26 }
  0x67   : > { %632 = vmatprep.mubr.bf16.mxu0 %v2318_v28  ;;  %1081 = vst [vmem:[%s2600_s18 + $0x70] sm:$0xff] %v2470_v26  ;;  %1082 = vst [vmem:[%s2600_s18 + $0x78] sm:$0xff] %v2470_v26 }
  0x6e   : > { %633 = vmatmul.mubr.bf16.gmra.mrb[24].mxu0 %v2320_v29 }
  0x6f   : > { %640 = vmatprep.mubr.bf16.mxu0 %v2321_v30 }
  0x76   : > { %641 = vmatmul.mubr.bf16.gmra.mrb[28].mxu0 %v2323_v31 }
 0x111   : > { %v1916_v34 = vpop.f32.mrb[0].mxu0 }
 0x112   : > { %v1917_v35 = vpop.f32.mrb[1].mxu0 }
 0x113   : > { %v1918_v36 = vadd.f32 %v1917_v35, %v1916_v34  ;;  %v1919_v37 = vpop.f32.mrb[2].mxu0 }
 0x114   : > { %v1920_v38 = vpop.f32.mrb[3].mxu0 }
 0x115   : > { %v1921_v39 = vadd.f32 %v1920_v38, %v1919_v37  ;;  %2096 = vmatprep.mubr.msk.f32.mxu1 %vm679_vm0, %v1918_v36 }
 0x117   : > { %2097 = vmatmul.mubr.msk.f32.vlgmr.msra.gmra.mrb[0].mxu1 %vm679_vm0, %v1921_v39 }
 0x118   : > { %2121 = vmatpush3.bf16.msra.mxu1 %v2325_v33 }
 0x119   : > { %v1922_v40 = vpop.f32.mrb[4].mxu0 }
 0x11a   : > { %v1923_v41 = vpop.f32.mrb[5].mxu0 }
 0x11b   : > { %v1924_v42 = vadd.f32 %v1923_v41, %v1922_v40  ;;  %v1925_v43 = vpop.f32.mrb[6].mxu0 }
 0x11c   : > { %v1926_v44 = vpop.f32.mrb[7].mxu0 }
 0x11d   : > { %v1927_v45 = vadd.f32 %v1926_v44, %v1925_v43  ;;  %2099 = vmatprep.mubr.msk.f32.mxu1 %vm679_vm0, %v1924_v42  ;;  %v2738_v44 = vld [vmem:[%s2923_s4] ss:$0 sm:$0xff] }
 0x11f   : > { %2100 = vmatmul.mubr.msk.f32.gmra.mrb[2].mxu1 %vm679_vm0, %v1927_v45 }
 0x121   : > { %v1928_v46 = vpop.f32.mrb[8].mxu0 }
 0x122   : > { %v1929_v47 = vpop.f32.mrb[9].mxu0 }
 0x123   : > { %v1930_v48 = vadd.f32 %v1929_v47, %v1928_v46  ;;  %v1931_v49 = vpop.f32.mrb[10].mxu0 }
 0x124   : > { %v1932_v50 = vpop.f32.mrb[11].mxu0 }
 0x125   : > { %v1933_v51 = vadd.f32 %v1932_v50, %v1931_v49  ;;  %2102 = vmatprep.mubr.msk.f32.mxu1 %vm679_vm0, %v1930_v48 }
 0x127   : > { %2103 = vmatmul.mubr.msk.f32.gmra.mrb[4].mxu1 %vm679_vm0, %v1933_v51 }
 0x129   : > { %v1934_v52 = vpop.f32.mrb[12].mxu0 }
 0x12a   : > { %v1935_v53 = vpop.f32.mrb[13].mxu0 }
 0x12b   : > { %v1936_v54 = vadd.f32 %v1935_v53, %v1934_v52  ;;  %v1937_v55 = vpop.f32.mrb[14].mxu0 }
 0x12c   : > { %v1938_v56 = vpop.f32.mrb[15].mxu0 }
 0x12d   : > { %v1939_v57 = vadd.f32 %v1938_v56, %v1937_v55  ;;  %2105 = vmatprep.mubr.msk.f32.mxu1 %vm679_vm0, %v1936_v54 }
 0x12f   : > { %2106 = vmatmul.mubr.msk.f32.gmra.mrb[6].mxu1 %vm679_vm0, %v1939_v57 }
 0x131   : > { %v1940_v58 = vpop.f32.mrb[16].mxu0 }
 0x132   : > { %v1941_v59 = vpop.f32.mrb[17].mxu0 }
 0x133   : > { %v1942_v60 = vadd.f32 %v1941_v59, %v1940_v58  ;;  %v1943_v61 = vpop.f32.mrb[18].mxu0 }
 0x134   : > { %v1944_v62 = vpop.f32.mrb[19].mxu0 }
 0x135   : > { %v1945_v63 = vadd.f32 %v1944_v62, %v1943_v61  ;;  %2108 = vmatprep.mubr.msk.f32.mxu1 %vm679_vm0, %v1942_v60 }
 0x137   : > { %2109 = vmatmul.mubr.msk.f32.gmra.mrb[8].mxu1 %vm679_vm0, %v1945_v63 }
 0x139   : > { %v1946_v0 = vpop.f32.mrb[20].mxu0 }
 0x13a   : > { %v1947_v1 = vpop.f32.mrb[21].mxu0 }
 0x13b   : > { %v1948_v2 = vadd.f32 %v1947_v1, %v1946_v0  ;;  %v1949_v3 = vpop.f32.mrb[22].mxu0 }
 0x13c   : > { %v1950_v4 = vpop.f32.mrb[23].mxu0 }
 0x13d   : > { %v1951_v5 = vadd.f32 %v1950_v4, %v1949_v3  ;;  %2111 = vmatprep.mubr.msk.f32.mxu1 %vm679_vm0, %v1948_v2 }
 0x13f   : > { %2112 = vmatmul.mubr.msk.f32.gmra.mrb[10].mxu1 %vm679_vm0, %v1951_v5 }
 0x141   : > { %v1952_v6 = vpop.f32.mrb[24].mxu0 }
 0x142   : > { %v1953_v7 = vpop.f32.mrb[25].mxu0 }
 0x143   : > { %v1954_v8 = vadd.f32 %v1953_v7, %v1952_v6  ;;  %v1955_v9 = vpop.f32.mrb[26].mxu0 }
 0x144   : > { %v1956_v10 = vpop.f32.mrb[27].mxu0 }
 0x145   : > { %v1957_v11 = vadd.f32 %v1956_v10, %v1955_v9  ;;  %2114 = vmatprep.mubr.msk.f32.mxu1 %vm679_vm0, %v1954_v8 }
 0x147   : > { %2115 = vmatmul.mubr.msk.f32.gmra.mrb[12].mxu1 %vm679_vm0, %v1957_v11 }
 0x149   : > { %v1958_v12 = vpop.f32.mrb[28].mxu0 }
 0x14a   : > { %v1959_v13 = vpop.f32.mrb[29].mxu0 }
 0x14b   : > { %v1960_v14 = vadd.f32 %v1959_v13, %v1958_v12  ;;  %v1961_v15 = vpop.f32.mrb[30].mxu0 }
 0x14c   : > { %v1962_v16 = vpop.f32.mrb[31].mxu0 }
 0x14d   : > { %v1963_v18 = vadd.f32 %v1962_v16, %v1961_v15  ;;  %2117 = vmatprep.mubr.msk.f32.mxu1 %vm679_vm0, %v1960_v14 }
 0x14f   : > { %2118 = vmatmul.mubr.msk.f32.gmra.mrb[14].mxu1 %vm679_vm0, %v1963_v18 }
 0x150   : > { %2122 = vmatprep.mubr.msk.bf16.mxu1 %vm679_vm0, %v2326_v17 }
 0x153   : > { %2123 = vmatmul.mubr.msk.bf16.vlgmr.msra.gmra.mrb[16].mxu1 %vm679_vm0, %v2327_v19 }
 0x154   : > { %2126 = vmatprep.mubr.msk.bf16.mxu1 %vm679_vm0, %v2328_v20 }
 0x15b   : > { %2127 = vmatmul.mubr.msk.bf16.gmra.mrb[20].mxu1 %vm679_vm0, %v2329_v21 }
 0x15c   : > { %2130 = vmatprep.mubr.msk.bf16.mxu1 %vm679_vm0, %v2330_v22 }
 0x163   : > { %2131 = vmatmul.mubr.msk.bf16.gmra.mrb[24].mxu1 %vm679_vm0, %v2331_v23 }
 0x164   : > { %2134 = vmatprep.mubr.msk.bf16.mxu1 %vm679_vm0, %v2332_v24 }
 0x16b   : > { %2135 = vmatmul.mubr.msk.bf16.gmra.mrb[28].mxu1 %vm679_vm0, %v2333_v25 }
 0x1ea   : > { %v2098_v27 = vpop.f32.mrb[0].mxu1 }
 0x1eb   : > { %v762_v28 = vpop.f32.mrb[1].mxu1 }
 0x1f2   : > { %v2101_v29 = vpop.f32.mrb[2].mxu1 }
 0x1f3   : > { %v772_v30 = vpop.f32.mrb[3].mxu1 }
 0x1fa   : > { %v2104_v31 = vpop.f32.mrb[4].mxu1 }
 0x1fb   : > { %v782_v32 = vpop.f32.mrb[5].mxu1 }
 0x202   : > { %v2107_v33 = vpop.f32.mrb[6].mxu1 }
 0x203   : > { %v792_v34 = vpop.f32.mrb[7].mxu1 }
 0x20a   : > { %v2110_v35 = vpop.f32.mrb[8].mxu1 }
 0x20b   : > { %v802_v36 = vpop.f32.mrb[9].mxu1 }
 0x212   : > { %v2113_v37 = vpop.f32.mrb[10].mxu1 }
 0x213   : > { %v812_v38 = vpop.f32.mrb[11].mxu1 }
 0x21a   : > { %v2727_v39 = vpop.f32.mrb[12].mxu1 }
 0x21b   : > { %v2729_v40 = vpop.f32.mrb[13].mxu1 }
 0x222   : > { %v2731_v41 = vpop.f32.mrb[14].mxu1 }
 0x223   : > { %v2733_v42 = vpop.f32.mrb[15].mxu1 }
 0x226   : > { %v2124_v43 = vpop.f32.mrb[16].mxu1 }
 0x227   : > { %v954_v45 = vadd.f32 %v2124_v43, %v772_v30  ;;  %v945_v46 = vpop.f32.mrb[17].mxu1 }
 0x228   : > { %v946_v47 = vadd.f32 %v945_v46, %v762_v28  ;;  %v2125_v48 = vpop.f32.mrb[18].mxu1 }
 0x229   : > { %v1017_v49 = vadd.f32 %v2738_v44, %v954_v45  ;;  %v957_v50 = vadd.f32 %v2125_v48, %v2101_v29  ;;  %v948_v51 = vpop.f32.mrb[19].mxu1 }
 0x22a   : > { %v1015_v52 = vadd.f32 %v2738_v44, %v946_v47  ;;  %v949_v53 = vadd.f32 %v2098_v27, %v948_v51 }
 0x22b   : > { %v1018_v54 = vadd.f32 %v2738_v44, %v957_v50  ;;  %v1033_v56 = vmax.f32 %v1017_v49, 0.0 }
 0x22c   : > { %v1016_v55 = vadd.f32 %v2738_v44, %v949_v53  ;;  %v1031_v58 = vmax.f32 %v1015_v52, 0.0 }
 0x22d   : > { %v1034_v57 = vmax.f32 %v1018_v54, 0.0 }
 0x22e   : > { %v1032_v59 = vmax.f32 %v1016_v55, 0.0  ;;  %v2128_v60 = vpop.f32.mrb[20].mxu1 }
 0x22f   : > { %v1048_v61 = vpack.c.bf16 %v1034_v57, %v1033_v56  ;;  %v970_v62 = vadd.f32 %v2128_v60, %v792_v34  ;;  %v961_v63 = vpop.f32.mrb[21].mxu1 }
 0x230   : > { %v1047_v0 = vpack.c.bf16 %v1032_v59, %v1031_v58  ;;  %v962_v1 = vadd.f32 %v961_v63, %v782_v32  ;;  %v2129_v2 = vpop.f32.mrb[22].mxu1 }
 0x231   : > { %1060 = vst [vmem:[%s2745_s23 + $0x8] sm:$0xff] %v1048_v61  ;;  %v1021_v3 = vadd.f32 %v2738_v44, %v970_v62  ;;  %v973_v4 = vadd.f32 %v2129_v2, %v2107_v33  ;;  %v964_v5 = vpop.f32.mrb[23].mxu1 }
 0x232   : > { %1059 = vst [vmem:[%s2745_s23] sm:$0xff] %v1047_v0  ;;  %v1019_v6 = vadd.f32 %v2738_v44, %v962_v1  ;;  %v965_v7 = vadd.f32 %v2104_v31, %v964_v5 }
 0x233   : > { %v1022_v8 = vadd.f32 %v2738_v44, %v973_v4  ;;  %v1037_v10 = vmax.f32 %v1021_v3, 0.0 }
 0x234   : > { %v1020_v9 = vadd.f32 %v2738_v44, %v965_v7  ;;  %v1035_v12 = vmax.f32 %v1019_v6, 0.0 }
 0x235   : > { %v1038_v11 = vmax.f32 %v1022_v8, 0.0 }
 0x236   : > { %v1036_v13 = vmax.f32 %v1020_v9, 0.0  ;;  %v2132_v14 = vpop.f32.mrb[24].mxu1 }
 0x237   : > { %v1050_v15 = vpack.c.bf16 %v1038_v11, %v1037_v10  ;;  %v986_v16 = vadd.f32 %v2132_v14, %v812_v38  ;;  %v977_v17 = vpop.f32.mrb[25].mxu1 }
 0x238   : > { %v1049_v18 = vpack.c.bf16 %v1036_v13, %v1035_v12  ;;  %v978_v19 = vadd.f32 %v977_v17, %v802_v36  ;;  %v2133_v20 = vpop.f32.mrb[26].mxu1 }
 0x239   : > { %1062 = vst [vmem:[%s2745_s23 + $0x18] sm:$0xff] %v1050_v15  ;;  %v1025_v21 = vadd.f32 %v2738_v44, %v986_v16  ;;  %v989_v22 = vadd.f32 %v2133_v20, %v2113_v37  ;;  %v980_v23 = vpop.f32.mrb[27].mxu1 }
 0x23a   : > { %1061 = vst [vmem:[%s2745_s23 + $0x10] sm:$0xff] %v1049_v18  ;;  %v1023_v24 = vadd.f32 %v2738_v44, %v978_v19  ;;  %v981_v25 = vadd.f32 %v2110_v35, %v980_v23 }
 0x23b   : > { %v1026_v26 = vadd.f32 %v2738_v44, %v989_v22  ;;  %v1041_v28 = vmax.f32 %v1025_v21, 0.0 }
 0x23c   : > { %v1024_v27 = vadd.f32 %v2738_v44, %v981_v25  ;;  %v1039_v30 = vmax.f32 %v1023_v24, 0.0 }
 0x23d   : > { %v1042_v29 = vmax.f32 %v1026_v26, 0.0 }
 0x23e   : > { %v1040_v31 = vmax.f32 %v1024_v27, 0.0  ;;  %v2136_v32 = vpop.f32.mrb[28].mxu1 }
 0x23f   : > { %v1052_v33 = vpack.c.bf16 %v1042_v29, %v1041_v28  ;;  %v1002_v34 = vadd.f32 %v2136_v32, %v2733_v42  ;;  %v993_v36 = vpop.f32.mrb[29].mxu1 }
 0x240   : > { %v1051_v37 = vpack.c.bf16 %v1040_v31, %v1039_v30  ;;  %v994_v38 = vadd.f32 %v993_v36, %v2729_v40  ;;  %v2137_v43 = vpop.f32.mrb[30].mxu1 }
 0x241   : > { %1064 = vst [vmem:[%s2745_s23 + $0x28] sm:$0xff] %v1052_v33  ;;  %v1029_v35 = vadd.f32 %v2738_v44, %v1002_v34  ;;  %v1005_v45 = vadd.f32 %v2137_v43, %v2731_v41  ;;  %v996_v46 = vpop.f32.mrb[31].mxu1 }
 0x242   : > { %1063 = vst [vmem:[%s2745_s23 + $0x20] sm:$0xff] %v1051_v37  ;;  %v1027_v47 = vadd.f32 %v2738_v44, %v994_v38  ;;  %v997_v48 = vadd.f32 %v2727_v39, %v996_v46 }
 0x243   : > { %v1030_v42 = vadd.f32 %v2738_v44, %v1005_v45  ;;  %v1045_v50 = vmax.f32 %v1029_v35, 0.0 }
 0x244   : > { %v1028_v49 = vadd.f32 %v2738_v44, %v997_v48  ;;  %v1043_v51 = vmax.f32 %v1027_v47, 0.0 }
 0x245   : > { %v1046_v40 = vmax.f32 %v1030_v42, 0.0 }
 0x246   : > { %v1044_v52 = vmax.f32 %v1028_v49, 0.0 }
 0x247   : > { %v1054_v53 = vpack.c.bf16 %v1046_v40, %v1045_v50 }
 0x248   : > { %v1053_v54 = vpack.c.bf16 %v1044_v52, %v1043_v51 }
 0x249   : > { %1066 = vst [vmem:[%s2745_s23 + $0x38] sm:$0xff] %v1054_v53 }
 0x24a   : > { %1065 = vst [vmem:[%s2745_s23 + $0x30] sm:$0xff] %v1053_v54 }
 0x24b PF: > { %p1858_p0 = scmp.ne.s32.totalorder %s2456_s9, 1 }
 0x24c   : > { %v2336_v57 = vld [vmem:[%s2598_s17 + $0x4] ss:$8 sps:$4 sm:$0xff] (!%p1858_p0)   ;;  %v2360_v4 = vld [vmem:[%s2925_s6 + $0x10] sm:$0xff] (!%p1858_p0)   ;;  %v2361_v7 = vld [vmem:[%s2925_s6 + $0x18] sm:$0xff] (!%p1858_p0)   ;;  %s1296_s10 = sshra.s32 (!%p1858_p0), %s2593_s25, 4 }
 0x24d   : > { %1086 = sbr.rel (%p1858_p0) target bundleno = 1147 (0x47b), region = 60  ;;  %1231 = vmatprep.mubr.bf16.mxu0 (!%p1858_p0), %v2336_v57  ;;  %v2358_v0 = vld [vmem:[%s2925_s6] sm:$0xff] (!%p1858_p0)   ;;  %v2359_v1 = vld [vmem:[%s2925_s6 + $0x8] sm:$0xff] (!%p1858_p0)   ;;  %v2337_v11 = vld [vmem:[%s2598_s17 + $0x14] ss:$8 sps:$4 sm:$0xff] (!%p1858_p0)   ;;  %s1875_s22 = sshll.u32 (!%p1858_p0), %s1296_s10, 3 }
 0x24e   : > { %2138 = vmatprep.subr.bf16.mxu1 (!%p1858_p0), %v2358_v0  ;;  %v2362_v9 = vld [vmem:[%s2925_s6 + $0x20] sm:$0xff] (!%p1858_p0)   ;;  %v2363_v12 = vld [vmem:[%s2925_s6 + $0x28] sm:$0xff] (!%p1858_p0)   ;;  %v2364_v13 = vld [vmem:[%s2925_s6 + $0x30] sm:$0xff] (!%p1858_p0)   ;;  %s1299_s23 = scalar_lea.vmem (!%p1858_p0), [#allocation2], %s1875_s22 }
 0x24f   : > { %2139 = vmatpush3.bf16.msra.mxu1 (!%p1858_p0), %v2358_v0  ;;  %v2334_v10 = vld [vmem:[%s2598_s17] ss:$8 sps:$4 sm:$0xff] (!%p1858_p0)   ;;  %v2339_v14 = vld [vmem:[%s2598_s17 + $0x10] ss:$8 sps:$4 sm:$0xff] (!%p1858_p0)   ;;  %v2340_v15 = vld [vmem:[%s2598_s17 + $0x24] ss:$8 sps:$4 sm:$0xff] (!%p1858_p0)  }
 0x250   : > { %2140 = vmatprep.subr.bf16.mxu1 (!%p1858_p0), %v2359_v1  ;;  %v2342_v16 = vld [vmem:[%s2598_s17 + $0x20] ss:$8 sps:$4 sm:$0xff] (!%p1858_p0)   ;;  %v2343_v17 = vld [vmem:[%s2598_s17 + $0x34] ss:$8 sps:$4 sm:$0xff] (!%p1858_p0)   ;;  %v2345_v18 = vld [vmem:[%s2598_s17 + $0x30] ss:$8 sps:$4 sm:$0xff] (!%p1858_p0)  }
 0x251   : > { %v1111_v41 = vld [vmem:[#allocation2 + $0x40] sm:$0xff] (!%p1858_p0)  ;;  %v1112_v39 = vld [vmem:[#allocation2 + $0x48] sm:$0xff] (!%p1858_p0)  ;;  %v1113_v56 = vld [vmem:[#allocation2 + $0x50] sm:$0xff] (!%p1858_p0) }
 0x252   : > { %v1103_v55 = vld [vmem:[#allocation2] sm:$0xff] (!%p1858_p0)  ;;  %1990 = vmatprep.subr.bf16.mxu0 (!%p1858_p0), %v1111_v41  ;;  %v1104_v44 = vld [vmem:[#allocation2 + $0x8] sm:$0xff] (!%p1858_p0)  ;;  %v1105_v58 = vld [vmem:[#allocation2 + $0x10] sm:$0xff] (!%p1858_p0) }
 0x253   : > { %1991 = vmatpush3.bf16.msra.mxu0 (!%p1858_p0), %v1103_v55  ;;  %v1114_v59 = vld [vmem:[#allocation2 + $0x58] sm:$0xff] (!%p1858_p0)  ;;  %v1115_v61 = vld [vmem:[#allocation2 + $0x60] sm:$0xff] (!%p1858_p0)  ;;  %v1116_v63 = vld [vmem:[#allocation2 + $0x68] sm:$0xff] (!%p1858_p0)  ;;  %2141 = vmatpush3.bf16.msra.mxu1 (!%p1858_p0), %v2359_v1 }
 0x254   : > { %1992 = vmatprep.subr.bf16.mxu0 %v1112_v39  ;;  %v1106_v60 = vld [vmem:[#allocation2 + $0x18] sm:$0xff]  ;;  %v1107_v62 = vld [vmem:[#allocation2 + $0x20] sm:$0xff]  ;;  %v1108_v2 = vld [vmem:[#allocation2 + $0x28] sm:$0xff]  ;;  %2142 = vmatprep.subr.bf16.mxu1 %v2360_v4 }
 0x255   : > { %v1117_v3 = vld [vmem:[#allocation2 + $0x70] sm:$0xff]  ;;  %v1118_v6 = vld [vmem:[#allocation2 + $0x78] sm:$0xff]  ;;  %v2346_v19 = vld [vmem:[%s2598_s17 + $0x44] ss:$8 sps:$4 sm:$0xff]  }
 0x256   : > { %v1109_v5 = vld [vmem:[#allocation2 + $0x30] sm:$0xff]  ;;  %v1110_v8 = vld [vmem:[#allocation2 + $0x38] sm:$0xff]  ;;  %v2348_v20 = vld [vmem:[%s2598_s17 + $0x40] ss:$8 sps:$4 sm:$0xff]  }
 0x257   : > { %1993 = vmatpush3.bf16.msra.mxu0 %v1104_v44  ;;  %2143 = vmatpush3.bf16.msra.mxu1 %v2360_v4  ;;  %v2349_v21 = vld [vmem:[%s2598_s17 + $0x54] ss:$8 sps:$4 sm:$0xff]   ;;  %v2351_v22 = vld [vmem:[%s2598_s17 + $0x50] ss:$8 sps:$4 sm:$0xff]   ;;  %v2352_v23 = vld [vmem:[%s2598_s17 + $0x64] ss:$8 sps:$4 sm:$0xff]  }
 0x258   : > { %1994 = vmatprep.subr.bf16.mxu0 %v1113_v56  ;;  %2144 = vmatprep.subr.bf16.mxu1 %v2361_v7  ;;  %v2354_v24 = vld [vmem:[%s2598_s17 + $0x60] ss:$8 sps:$4 sm:$0xff]   ;;  %v2355_v25 = vld [vmem:[%s2598_s17 + $0x74] ss:$8 sps:$4 sm:$0xff]   ;;  %v2357_v26 = vld [vmem:[%s2598_s17 + $0x70] ss:$8 sps:$4 sm:$0xff]  }
 0x259   : > { %v2365_v27 = vld [vmem:[%s2925_s6 + $0x38] sm:$0xff]   ;;  %v2366_v28 = vld [vmem:[%s2924_s5] sm:$0xff]   ;;  %v2367_v36 = vld [vmem:[%s2924_s5 + $0x8] sm:$0xff]  }
 0x25a   : > { %v2368_v38 = vld [vmem:[%s2924_s5 + $0x10] sm:$0xff]   ;;  %v2369_v48 = vld [vmem:[%s2924_s5 + $0x18] sm:$0xff]   ;;  %v2370_v49 = vld [vmem:[%s2924_s5 + $0x20] sm:$0xff]  }
 0x25b   : > { %1995 = vmatpush3.bf16.msra.mxu0 %v1105_v58  ;;  %2145 = vmatpush3.bf16.msra.mxu1 %v2361_v7  ;;  %v2371_v54 = vld [vmem:[%s2924_s5 + $0x28] sm:$0xff]   ;;  %v2372_v55 = vld [vmem:[%s2924_s5 + $0x30] sm:$0xff]  }
 0x25c   : > { %1996 = vmatprep.subr.bf16.mxu0 %v1114_v59  ;;  %2146 = vmatprep.subr.bf16.mxu1 %v2362_v9  ;;  %v2373_v59 = vld [vmem:[%s2924_s5 + $0x38] sm:$0xff]  }
 0x25f   : > { %1997 = vmatpush3.bf16.msra.mxu0 %v1106_v60  ;;  %2147 = vmatpush3.bf16.msra.mxu1 %v2362_v9 }
 0x260   : > { %1998 = vmatprep.subr.bf16.mxu0 %v1115_v61  ;;  %2148 = vmatprep.subr.bf16.mxu1 %v2363_v12 }
 0x263   : > { %1999 = vmatpush3.bf16.msra.mxu0 %v1107_v62  ;;  %2149 = vmatpush3.bf16.msra.mxu1 %v2363_v12 }
 0x264   : > { %2000 = vmatprep.subr.bf16.mxu0 %v1116_v63  ;;  %2150 = vmatprep.subr.bf16.mxu1 %v2364_v13 }
 0x267   : > { %2001 = vmatpush3.bf16.msra.mxu0 %v1108_v2  ;;  %2151 = vmatpush3.bf16.msra.mxu1 %v2364_v13 }
 0x268   : > { %2002 = vmatprep.subr.bf16.mxu0 %v1117_v3  ;;  %2152 = vmatprep.subr.bf16.mxu1 %v2365_v27 }
 0x26b   : > { %2003 = vmatpush3.bf16.msra.mxu0 %v1109_v5  ;;  %2153 = vmatpush3.bf16.msra.mxu1 %v2365_v27  ;;  %v1307_v27 = vld [vmem:[%s1299_s23 + $0x38] sm:$0xff] }
 0x26c   : > { %2004 = vmatprep.subr.bf16.mxu0 %v1118_v6  ;;  %2178 = vmatprep.subr.bf16.mxu1 %v2366_v28 }
 0x26f   : > { %2005 = vmatpush3.bf16.msra.mxu0 %v1110_v8 }
 0x272   : > { %1232 = vmatmul.mubr.bf16.vlgmr.msra.gmra.mrb[0].mxu0 %v2334_v10 }
 0x273   : > { %1239 = vmatprep.mubr.bf16.mxu0 %v2337_v11 }
 0x27a   : > { %1240 = vmatmul.mubr.bf16.gmra.mrb[4].mxu0 %v2339_v14 }
 0x27b   : > { %1247 = vmatprep.mubr.bf16.mxu0 %v2340_v15 }
 0x282   : > { %1248 = vmatmul.mubr.bf16.gmra.mrb[8].mxu0 %v2342_v16 }
 0x283   : > { %1255 = vmatprep.mubr.bf16.mxu0 %v2343_v17 }
 0x28a   : > { %1256 = vmatmul.mubr.bf16.gmra.mrb[12].mxu0 %v2345_v18 }
 0x28b   : > { %1263 = vmatprep.mubr.bf16.mxu0 %v2346_v19 }
 0x292   : > { %1264 = vmatmul.mubr.bf16.gmra.mrb[16].mxu0 %v2348_v20  ;;  %v1300_v20 = vld [vmem:[%s1299_s23] sm:$0xff] }
 0x293   : > { %1271 = vmatprep.mubr.bf16.mxu0 %v2349_v21  ;;  %v1301_v21 = vld [vmem:[%s1299_s23 + $0x8] sm:$0xff] }
 0x29a   : > { %1272 = vmatmul.mubr.bf16.gmra.mrb[20].mxu0 %v2351_v22  ;;  %v1302_v22 = vld [vmem:[%s1299_s23 + $0x10] sm:$0xff] }
 0x29b   : > { %1279 = vmatprep.mubr.bf16.mxu0 %v2352_v23  ;;  %v1303_v23 = vld [vmem:[%s1299_s23 + $0x18] sm:$0xff] }
 0x2a2   : > { %1280 = vmatmul.mubr.bf16.gmra.mrb[24].mxu0 %v2354_v24  ;;  %v1304_v24 = vld [vmem:[%s1299_s23 + $0x20] sm:$0xff] }
 0x2a3   : > { %1287 = vmatprep.mubr.bf16.mxu0 %v2355_v25  ;;  %v1305_v25 = vld [vmem:[%s1299_s23 + $0x28] sm:$0xff] }
 0x2aa   : > { %1288 = vmatmul.mubr.bf16.gmra.mrb[28].mxu0 %v2357_v26  ;;  %v1306_v26 = vld [vmem:[%s1299_s23 + $0x30] sm:$0xff] }
 0x345   : > { %v2006_v29 = vpop.f32.mrb[0].mxu0 }
 0x346   : > { %v2007_v30 = vpop.f32.mrb[1].mxu0 }
 0x347   : > { %v2009_v31 = vpop.f32.mrb[2].mxu0  ;;  %v2008_v32 = vadd.f32 %v2007_v30, %v2006_v29 }
 0x348   : > { %v2010_v33 = vpop.f32.mrb[3].mxu0 }
 0x349   : > { %v2011_v34 = vadd.f32 %v2010_v33, %v2009_v31  ;;  %2154 = vmatprep.mubr.f32.mxu1 %v2008_v32 }
 0x34b   : > { %2155 = vmatmul.mubr.f32.vlgmr.msra.gmra.mrb[0].mxu1 %v2011_v34 }
 0x34c   : > { %2179 = vmatpush3.bf16.msra.mxu1 %v2366_v28 }
 0x34d   : > { %v2012_v37 = vpop.f32.mrb[4].mxu0  ;;  %2180 = vmatprep.subr.bf16.mxu1 %v2367_v36 }
 0x34e   : > { %v2013_v43 = vpop.f32.mrb[5].mxu0 }
 0x34f   : > { %v2014_v35 = vadd.f32 %v2013_v43, %v2012_v37  ;;  %v2015_v45 = vpop.f32.mrb[6].mxu0 }
 0x350   : > { %v2016_v46 = vpop.f32.mrb[7].mxu0  ;;  %2181 = vmatpush3.bf16.msra.mxu1 %v2367_v36 }
 0x351   : > { %v2017_v47 = vadd.f32 %v2016_v46, %v2015_v45  ;;  %2157 = vmatprep.mubr.f32.mxu1 %v2014_v35  ;;  %2182 = vmatprep.subr.bf16.mxu1 %v2368_v38 }
 0x353   : > { %2158 = vmatmul.mubr.f32.gmra.mrb[2].mxu1 %v2017_v47 }
 0x354   : > { %2183 = vmatpush3.bf16.msra.mxu1 %v2368_v38 }
 0x355   : > { %v2018_v42 = vpop.f32.mrb[8].mxu0  ;;  %2184 = vmatprep.subr.bf16.mxu1 %v2369_v48 }
 0x356   : > { %v2019_v50 = vpop.f32.mrb[9].mxu0 }
 0x357   : > { %v2020_v40 = vadd.f32 %v2019_v50, %v2018_v42  ;;  %v2021_v51 = vpop.f32.mrb[10].mxu0 }
 0x358   : > { %v2022_v52 = vpop.f32.mrb[11].mxu0  ;;  %2185 = vmatpush3.bf16.msra.mxu1 %v2369_v48 }
 0x359   : > { %v2023_v53 = vadd.f32 %v2022_v52, %v2021_v51  ;;  %2160 = vmatprep.mubr.f32.mxu1 %v2020_v40  ;;  %2186 = vmatprep.subr.bf16.mxu1 %v2370_v49 }
 0x35b   : > { %2161 = vmatmul.mubr.f32.gmra.mrb[4].mxu1 %v2023_v53 }
 0x35c   : > { %2187 = vmatpush3.bf16.msra.mxu1 %v2370_v49  ;;  %v1892_v49 = vld [vmem:[%s2926_s7] ss:$0 sm:$0xff] }
 0x35d   : > { %v2024_v41 = vpop.f32.mrb[12].mxu0  ;;  %2188 = vmatprep.subr.bf16.mxu1 %v2371_v54 }
 0x35e   : > { %v2025_v39 = vpop.f32.mrb[13].mxu0 }
 0x35f   : > { %v2026_v44 = vadd.f32 %v2025_v39, %v2024_v41  ;;  %v2027_v56 = vpop.f32.mrb[14].mxu0 }
 0x360   : > { %v2028_v57 = vpop.f32.mrb[15].mxu0  ;;  %2189 = vmatpush3.bf16.msra.mxu1 %v2371_v54 }
 0x361   : > { %v2029_v58 = vadd.f32 %v2028_v57, %v2027_v56  ;;  %2163 = vmatprep.mubr.f32.mxu1 %v2026_v44  ;;  %2190 = vmatprep.subr.bf16.mxu1 %v2372_v55 }
 0x363   : > { %2164 = vmatmul.mubr.f32.gmra.mrb[6].mxu1 %v2029_v58 }
 0x364   : > { %2191 = vmatpush3.bf16.msra.mxu1 %v2372_v55 }
 0x365   : > { %v2030_v60 = vpop.f32.mrb[16].mxu0  ;;  %2192 = vmatprep.subr.bf16.mxu1 %v2373_v59 }
 0x366   : > { %v2031_v61 = vpop.f32.mrb[17].mxu0 }
 0x367   : > { %v2032_v62 = vadd.f32 %v2031_v61, %v2030_v60  ;;  %v2033_v63 = vpop.f32.mrb[18].mxu0 }
 0x368   : > { %v2034_v0 = vpop.f32.mrb[19].mxu0  ;;  %2193 = vmatpush3.bf16.msra.mxu1 %v2373_v59 }
 0x369   : > { %v2035_v1 = vadd.f32 %v2034_v0, %v2033_v63  ;;  %2166 = vmatprep.mubr.f32.mxu1 %v2032_v62 }
 0x36b   : > { %2167 = vmatmul.mubr.f32.gmra.mrb[8].mxu1 %v2035_v1 }
 0x36d   : > { %v2036_v2 = vpop.f32.mrb[20].mxu0 }
 0x36e   : > { %v2037_v3 = vpop.f32.mrb[21].mxu0 }
 0x36f   : > { %v2038_v4 = vadd.f32 %v2037_v3, %v2036_v2  ;;  %v2039_v5 = vpop.f32.mrb[22].mxu0 }
 0x370   : > { %v2040_v6 = vpop.f32.mrb[23].mxu0 }
 0x371   : > { %v2041_v7 = vadd.f32 %v2040_v6, %v2039_v5  ;;  %2169 = vmatprep.mubr.f32.mxu1 %v2038_v4 }
 0x373   : > { %2170 = vmatmul.mubr.f32.gmra.mrb[10].mxu1 %v2041_v7 }
 0x375   : > { %v2042_v8 = vpop.f32.mrb[24].mxu0 }
 0x376   : > { %v2043_v9 = vpop.f32.mrb[25].mxu0 }
 0x377   : > { %v2044_v10 = vadd.f32 %v2043_v9, %v2042_v8  ;;  %v2045_v11 = vpop.f32.mrb[26].mxu0 }
 0x378   : > { %v2046_v12 = vpop.f32.mrb[27].mxu0 }
 0x379   : > { %v2047_v13 = vadd.f32 %v2046_v12, %v2045_v11  ;;  %2172 = vmatprep.mubr.f32.mxu1 %v2044_v10 }
 0x37b   : > { %2173 = vmatmul.mubr.f32.gmra.mrb[12].mxu1 %v2047_v13 }
 0x37d   : > { %v2048_v14 = vpop.f32.mrb[28].mxu0 }
 0x37e   : > { %v2049_v15 = vpop.f32.mrb[29].mxu0 }
 0x37f   : > { %v2050_v16 = vadd.f32 %v2049_v15, %v2048_v14  ;;  %v2051_v17 = vpop.f32.mrb[30].mxu0 }
 0x380   : > { %v2052_v18 = vpop.f32.mrb[31].mxu0 }
 0x381   : > { %v2053_v19 = vadd.f32 %v2052_v18, %v2051_v17  ;;  %2175 = vmatprep.mubr.f32.mxu1 %v2050_v16 }
 0x383   : > { %2176 = vmatmul.mubr.f32.gmra.mrb[14].mxu1 %v2053_v19 }
 0x384   : > { %2194 = vmatprep.mubr.bf16.mxu1 %v1300_v20 }
 0x387   : > { %2195 = vmatmul.mubr.bf16.vlgmr.msra.gmra.mrb[16].mxu1 %v1301_v21 }
 0x388   : > { %2198 = vmatprep.mubr.bf16.mxu1 %v1302_v22 }
 0x38f   : > { %2199 = vmatmul.mubr.bf16.gmra.mrb[20].mxu1 %v1303_v23 }
 0x390   : > { %2202 = vmatprep.mubr.bf16.mxu1 %v1304_v24 }
 0x397   : > { %2203 = vmatmul.mubr.bf16.gmra.mrb[24].mxu1 %v1305_v25 }
 0x398   : > { %2206 = vmatprep.mubr.bf16.mxu1 %v1306_v26 }
 0x39f   : > { %2207 = vmatmul.mubr.bf16.gmra.mrb[28].mxu1 %v1307_v27 }
 0x41e   : > { %v2156_v28 = vpop.f32.mrb[0].mxu1 }
 0x41f   : > { %v1422_v29 = vpop.f32.mrb[1].mxu1 }
 0x426   : > { %v2159_v30 = vpop.f32.mrb[2].mxu1 }
 0x427   : > { %v1432_v31 = vpop.f32.mrb[3].mxu1 }
 0x42e   : > { %v2162_v32 = vpop.f32.mrb[4].mxu1 }
 0x42f   : > { %v1442_v33 = vpop.f32.mrb[5].mxu1 }
 0x436   : > { %v2165_v34 = vpop.f32.mrb[6].mxu1 }
 0x437   : > { %v1452_v36 = vpop.f32.mrb[7].mxu1 }
 0x43e   : > { %v2168_v37 = vpop.f32.mrb[8].mxu1 }
 0x43f   : > { %v1462_v38 = vpop.f32.mrb[9].mxu1 }
 0x446   : > { %v2171_v43 = vpop.f32.mrb[10].mxu1 }
 0x447   : > { %v1472_v35 = vpop.f32.mrb[11].mxu1 }
 0x44e   : > { %v2174_v45 = vpop.f32.mrb[12].mxu1 }
 0x44f   : > { %v1482_v46 = vpop.f32.mrb[13].mxu1 }
 0x456   : > { %v2177_v47 = vpop.f32.mrb[14].mxu1 }
 0x457   : > { %v1492_v48 = vpop.f32.mrb[15].mxu1 }
 0x45a   : > { %v2196_v42 = vpop.f32.mrb[16].mxu1 }
 0x45b   : > { %v1592_v50 = vadd.f32 %v2196_v42, %v1432_v31  ;;  %v1583_v40 = vpop.f32.mrb[17].mxu1 }
 0x45c   : > { %v1584_v51 = vadd.f32 %v1583_v40, %v1422_v29  ;;  %v2197_v52 = vpop.f32.mrb[18].mxu1 }
 0x45d   : > { %v1655_v53 = vadd.f32 %v1892_v49, %v1592_v50  ;;  %v1595_v54 = vadd.f32 %v2197_v52, %v2159_v30  ;;  %v1586_v41 = vpop.f32.mrb[19].mxu1 }
 0x45e   : > { %v1653_v55 = vadd.f32 %v1892_v49, %v1584_v51  ;;  %v1587_v39 = vadd.f32 %v2156_v28, %v1586_v41 }
 0x45f   : > { %1671 = vst [vmem:[%s2600_s18 + $0x10] sm:$0xff] %v1655_v53  ;;  %v1656_v44 = vadd.f32 %v1892_v49, %v1595_v54 }
 0x460   : > { %1669 = vst [vmem:[%s2600_s18] sm:$0xff] %v1653_v55  ;;  %v1654_v56 = vadd.f32 %v1892_v49, %v1587_v39 }
 0x461   : > { %1672 = vst [vmem:[%s2600_s18 + $0x18] sm:$0xff] %v1656_v44 }
 0x462   : > { %1670 = vst [vmem:[%s2600_s18 + $0x8] sm:$0xff] %v1654_v56  ;;  %v2200_v57 = vpop.f32.mrb[20].mxu1 }
 0x463   : > { %v1608_v58 = vadd.f32 %v2200_v57, %v1452_v36  ;;  %v1599_v59 = vpop.f32.mrb[21].mxu1 }
 0x464   : > { %v1600_v60 = vadd.f32 %v1599_v59, %v1442_v33  ;;  %v2201_v61 = vpop.f32.mrb[22].mxu1 }
 0x465   : > { %v1659_v62 = vadd.f32 %v1892_v49, %v1608_v58  ;;  %v1611_v63 = vadd.f32 %v2201_v61, %v2165_v34  ;;  %v1602_v0 = vpop.f32.mrb[23].mxu1 }
 0x466   : > { %v1657_v1 = vadd.f32 %v1892_v49, %v1600_v60  ;;  %v1603_v2 = vadd.f32 %v2162_v32, %v1602_v0 }
 0x467   : > { %1675 = vst [vmem:[%s2600_s18 + $0x30] sm:$0xff] %v1659_v62  ;;  %v1660_v3 = vadd.f32 %v1892_v49, %v1611_v63 }
 0x468   : > { %1673 = vst [vmem:[%s2600_s18 + $0x20] sm:$0xff] %v1657_v1  ;;  %v1658_v4 = vadd.f32 %v1892_v49, %v1603_v2 }
 0x469   : > { %1676 = vst [vmem:[%s2600_s18 + $0x38] sm:$0xff] %v1660_v3 }
 0x46a   : > { %1674 = vst [vmem:[%s2600_s18 + $0x28] sm:$0xff] %v1658_v4  ;;  %v2204_v5 = vpop.f32.mrb[24].mxu1 }
 0x46b   : > { %v1624_v6 = vadd.f32 %v2204_v5, %v1472_v35  ;;  %v1615_v7 = vpop.f32.mrb[25].mxu1 }
 0x46c   : > { %v1616_v8 = vadd.f32 %v1615_v7, %v1462_v38  ;;  %v2205_v9 = vpop.f32.mrb[26].mxu1 }
 0x46d   : > { %v1663_v10 = vadd.f32 %v1892_v49, %v1624_v6  ;;  %v1627_v11 = vadd.f32 %v2205_v9, %v2171_v43  ;;  %v1618_v12 = vpop.f32.mrb[27].mxu1 }
 0x46e   : > { %v1661_v13 = vadd.f32 %v1892_v49, %v1616_v8  ;;  %v1619_v14 = vadd.f32 %v2168_v37, %v1618_v12 }
 0x46f   : > { %1679 = vst [vmem:[%s2600_s18 + $0x50] sm:$0xff] %v1663_v10  ;;  %v1664_v15 = vadd.f32 %v1892_v49, %v1627_v11 }
 0x470   : > { %1677 = vst [vmem:[%s2600_s18 + $0x40] sm:$0xff] %v1661_v13  ;;  %v1662_v16 = vadd.f32 %v1892_v49, %v1619_v14 }
 0x471   : > { %1680 = vst [vmem:[%s2600_s18 + $0x58] sm:$0xff] %v1664_v15 }
 0x472   : > { %1678 = vst [vmem:[%s2600_s18 + $0x48] sm:$0xff] %v1662_v16  ;;  %v2208_v17 = vpop.f32.mrb[28].mxu1 }
 0x473   : > { %v1640_v18 = vadd.f32 %v2208_v17, %v1492_v48  ;;  %v1631_v19 = vpop.f32.mrb[29].mxu1 }
 0x474   : > { %v1632_v20 = vadd.f32 %v1631_v19, %v1482_v46  ;;  %v2209_v21 = vpop.f32.mrb[30].mxu1 }
 0x475   : > { %v1667_v22 = vadd.f32 %v1892_v49, %v1640_v18  ;;  %v1643_v23 = vadd.f32 %v2209_v21, %v2177_v47  ;;  %v1634_v24 = vpop.f32.mrb[31].mxu1 }
 0x476   : > { %v1665_v25 = vadd.f32 %v1892_v49, %v1632_v20  ;;  %v1635_v26 = vadd.f32 %v2174_v45, %v1634_v24 }
 0x477   : > { %1683 = vst [vmem:[%s2600_s18 + $0x70] sm:$0xff] %v1667_v22  ;;  %v1668_v27 = vadd.f32 %v1892_v49, %v1643_v23 }
 0x478   : > { %1681 = vst [vmem:[%s2600_s18 + $0x60] sm:$0xff] %v1665_v25  ;;  %v1666_v28 = vadd.f32 %v1892_v49, %v1635_v26 }
 0x479   : > { %1684 = vst [vmem:[%s2600_s18 + $0x78] sm:$0xff] %v1668_v27 }
 0x47a   : > { %1682 = vst [vmem:[%s2600_s18 + $0x68] sm:$0xff] %v1666_v28 }
 0x47b PF: > { %s1899_s26 = sshll.u32 %s2452_s30, 11  ;;  %s1699_s15 = sshll.u32 %s2600_s18, 4  ;;  %s2863_s15 = int_to_ptr.vmem [resolvable:$true] %s1699_s15 }
 0x47c   : > { %s2860_s14 = scalar_lea.hbm %s2927_s8, %s1899_s26  ;;  %s2938_s11 = sand.u32 1, %s2444_s28  }
 0x47d   : > { %s2867_s17 = scalar_lea.sflag [#allocation4], %s2938_s11  ;;  %s2374_s16 = scalar_lea.vmem %s2863_s15, 2048 }
 0x47e   : > { %p2375_p1 = scmp.ne.s32.totalorder %s2863_s15, %s2374_s16  ;;  %s2471_s30 = smov [#allocation3]  }
 0x47f   : > { %s2378_s10 = sshll.u32 %s2471_s30, 4  ;;  %s2379_s10 = int_to_ptr.vmem [resolvable:$false] %s2378_s10 }
 0x480   : > { %p2376_p2 = pnand %p2375_p1, %p2571_p3  ;;  %s2380_s22 = scalar_lea.vmem %s2379_s10, 4096 }
 0x481   : > { %p2381_p5 = scmp.lt.s32.totalorder %s2863_s15, %s2379_s10  ;;  %p2382_p6 = scmp.lt.s32.totalorder %s2380_s22, %s2374_s16 }
 0x482   : > { %p2377_p4 = pneg %p2376_p2 }
 0x483   : > { %p2383_p7 = por %p2382_p6, %p2381_p5 }
 0x485   : > { %p2384_p9 = pnand %p2383_p7, %p2377_p4 }
 0x487   : > { %2387 = shalt.err (!%p2384_p9)
}
 0x488   : > { %s2388_s18 = scalar_lea.hbm %s2860_s14, 2048  ;;  %s2392_s9 = scalar_lea.hbm %s2927_s8, 4096 }
 0x489   : > { %p2389_p10 = scmp.ne.s32.totalorder %s2860_s14, %s2388_s18  ;;  %p2393_p13 = scmp.lt.u32.totalorder %s2860_s14, %s2927_s8 }
 0x48a   : > { %p2394_p0 = scmp.lt.u32.totalorder %s2392_s9, %s2388_s18  ;;  %p2396_p2 = scmp.lt.u32.totalorder %s2388_s18, %s2860_s14 }
 0x48b   : > { %p2390_p11 = pnand %p2389_p10, %p2571_p3 }
 0x48c   : > { %p2395_p1 = por %p2394_p0, %p2393_p13 }
 0x48d   : > { %p2391_p12 = pneg %p2390_p11 }
 0x48e   : > { %p2397_p4 = por %p2396_p2, %p2395_p1 }
 0x490   : > { %p2398_p5 = pnand %p2397_p4, %p2391_p12 }
 0x492   : > { %2401 = shalt.err (!%p2398_p5)
}
 0x493   : > { %s2472_s13 = smov 128   ;;  %s2473_s11 = smov 8  }
 0x494   : > { %2210 = dma.vmem_to_hbm [thread:$0]  (%p2571_p3), %s2863_s15, 2048, %s2860_s14, %s2867_s17, %s2472_s13, %s2472_s13, %s2473_s11  }
 0x495 PF: > { %p2216_p6 = scmp.ge.s32.totalorder %s2468_s12, 2  ;;  %s1714_s16 = sand.u32 1, %s2440_s27  }
 0x496   : > { %s1715_s30 = scalar_lea.sflag [#allocation4], %s1714_s16 }
 0x497   : > { %p2213_p7 = pnand %p2216_p6, %p2582_p8 }
 0x499   : > { %2435 = dma.done.wait (!%p2213_p7), %s1715_s30, 2048  }
 0x49a   : > { %2437 = vsyncadd (!%p2213_p7), %s1715_s30, 4294965248  ;;  %s21_s12 = sadd.s32 1, %s2468_s12   ;;  %s2939_s30 = sld [smem:[#allocation6_spill]] }
 0x49b   : > { %p18_p9 = scmp.ge.s32.totalorder %s21_s12, 6   ;;  %s2940_s9 = sld [smem:[#allocation7_spill]] }
 0x49c   : > { %s2941_s10 = sld [smem:[#allocation8_spill]]  ;;  %s2942_s11 = sld [smem:[#allocation9_spill]] }
 0x49d   : > { %s2943_s27 = smov %s2444_s28  ;;  %s2944_s28 = smov %s2448_s29 }
 0x49e   : > { %s2945_s29 = smov %s2580_s20  ;;  %20 = sbr.rel (!%p18_p9) target bundleno = 5 (0x5), region = 98 }
 0x4a5   :  { %1720 = vsyncpa [#allocation4], 1 }
 0x4a6   :  { %1722 = vsyncpa [#allocation4 + $0x1], 1 }

</bundles_post_ra>
